<compile_context>
chip_gen: v7x
topology: tpu7x:2x2x1
jax: 0.10.0
libtpu: 0.0.40
codegen_flags: <defaults>
</compile_context>

<pallas_src>
import functools

import jax
import jax.numpy as jnp
from jax import lax
from jax.experimental import pallas as pl
from jax.experimental.pallas import tpu as pltpu


def _tile_body(logits_t_ref, target_ref, acc_num, acc_p, *, masked):
    """Per-tile streaming work: softmax over classes + partial-sum accumulation."""
    x = logits_t_ref[...].astype(jnp.float32)          # (C, tn)
    tgt = target_ref[...]                              # (1, tn) int32, -1 == padding
    c = x.shape[0]

    # softmax over the class (sublane) axis; divide goes to EUP via pl.reciprocal.
    m = jnp.max(x, axis=0, keepdims=True)              # (1, tn)
    e = jnp.exp(x - m)                                  # (C, tn)
    z = jnp.sum(e, axis=0, keepdims=True)               # (1, tn)
    p = e * pl.reciprocal(z, approx=False)              # (C, tn) probabilities

    # numerator (un-normalized): sum_c (c - t)^2 p_c = S2 - 2 t S1 + t^2
    # (the 1/(C-1)^2 factor cancels against the denominator in the wrapper).
    ci = lax.broadcasted_iota(jnp.int32, (c, 1), 0).astype(jnp.float32)  # per-sublane const
    t = tgt.astype(jnp.float32)                          # (1, tn)
    s1 = jnp.sum(ci * p, axis=0, keepdims=True)          # (1, tn)
    s2 = jnp.sum((ci * ci) * p, axis=0, keepdims=True)   # (1, tn)
    num_col = s2 - 2.0 * t * s1 + t * t                  # (1, tn)

    if masked:
        valid = tgt >= 0                                  # only the tail tile has padding
        p = jnp.where(valid, p, 0.0)
        num_col = jnp.where(valid, num_col, 0.0)

    # wide accumulators: pure vreg-wise adds, no per-tile cross-lane reduction.
    acc_p[...] += p
    acc_num[...] += num_col


def _qwk_kernel(logits_t_ref, target_ref, num_ref, hp_ref, acc_num, acc_p, *, mask_last):
    pid = pl.program_id(0)
    last = pl.num_programs(0) - 1

    @pl.when(pid == 0)
    def _init():
        acc_num[...] = jnp.zeros_like(acc_num)
        acc_p[...] = jnp.zeros_like(acc_p)

    if mask_last:
        # Only the last tile can hold padded samples; keep interior tiles mask-free.
        @pl.when(pid != last)
        def _interior():
            _tile_body(logits_t_ref, target_ref, acc_num, acc_p, masked=False)

        @pl.when(pid == last)
        def _tail():
            _tile_body(logits_t_ref, target_ref, acc_num, acc_p, masked=True)
    else:
        _tile_body(logits_t_ref, target_ref, acc_num, acc_p, masked=False)

    @pl.when(pid == last)
    def _finalize():
        # single cross-lane (XLU) reduction for the whole kernel.
        num_ref[...] = jnp.sum(acc_num[...], axis=1, keepdims=True)   # (1, 1)
        hp_ref[...] = jnp.sum(acc_p[...], axis=1, keepdims=True)      # (C, 1)


def qwk_loss(logits, target, *, num_classes=3, scale=2.0, block_n=65536,
             stream_dtype=None):
    """QWK loss.

    logits: (N, num_classes) float; target: (N,) or (N, 1) class indices (any dtype).
    block_n: streaming tile width in samples (lanes); must be a multiple of 128.
             Sweep 32768-131072; 65536 fits comfortably in VMEM on v5e/v6e/v7x.
    stream_dtype: optional dtype for the streamed logits (e.g. jnp.bfloat16 to halve
             HBM bytes); kernel math is always f32.
    """
    n, c = logits.shape
    assert c == num_classes, (c, num_classes)
    assert num_classes >= 2
    assert block_n > 0 and block_n % 128 == 0, "block_n must be a positive multiple of 128"

    n128 = ((n + 127) // 128) * 128
    tn = min(block_n, n128)
    n_total = ((n + tn - 1) // tn) * tn
    grid_n = n_total // tn
    mask_last = (n_total != n)

    # Lane-dense (C, N) layout, NO class-axis padding. Sample padding -> target -1.
    dt = logits.dtype if stream_dtype is None else stream_dtype
    logits_t = jnp.transpose(logits).astype(dt)                    # (C, N)
    tgt = jnp.reshape(target, (-1,)).astype(jnp.int32)             # (N,)
    if n_total != n:
        logits_t = jnp.pad(logits_t, ((0, 0), (0, n_total - n)))
        tgt_p = jnp.pad(tgt, (0, n_total - n), constant_values=-1)
    else:
        tgt_p = tgt
    tgt_p = tgt_p.reshape(1, n_total)

    kernel = functools.partial(_qwk_kernel, mask_last=mask_last)

    num_raw, hp = pl.pallas_call(
        kernel,
        out_shape=(
            jax.ShapeDtypeStruct((1, 1), jnp.float32),             # un-normalized numerator
            jax.ShapeDtypeStruct((num_classes, 1), jnp.float32),   # per-class prob mass
        ),
        grid_spec=pltpu.PrefetchScalarGridSpec(
            num_scalar_prefetch=0,
            grid=(grid_n,),
            in_specs=[
                pl.BlockSpec((num_classes, tn), lambda i: (0, i)),
                pl.BlockSpec((1, tn), lambda i: (0, i)),
            ],
            out_specs=(
                pl.BlockSpec((1, 1), lambda i: (0, 0)),
                pl.BlockSpec((num_classes, 1), lambda i: (0, 0)),
            ),
            scratch_shapes=[
                pltpu.VMEM((1, tn), jnp.float32),            # numerator partial sums
                pltpu.VMEM((num_classes, tn), jnp.float32),  # prob-mass partial sums
            ],
        ),
        compiler_params=pltpu.CompilerParams(
            dimension_semantics=("arbitrary",),
            vmem_limit_bytes=32 * 1024 * 1024,
        ),
    )(logits_t, tgt_p)

    # Tiny O(C) / O(C^2) epilogue in plain JAX (moved out of the kernel per review).
    ht = jnp.sum(jax.nn.one_hot(tgt, num_classes, dtype=jnp.float32), axis=0)   # (C,)
    hp_vec = hp[:, 0]                                                           # (C,)
    ci = jnp.arange(num_classes, dtype=jnp.float32)
    w_raw = (ci[None, :] - ci[:, None]) ** 2      # un-normalized weights; (C-1)^2 cancels
    den_raw = jnp.sum(w_raw * (ht[:, None] * hp_vec[None, :])) / jnp.float32(n)
    qwk = 1.0 - num_raw[0, 0] / den_raw
    z = jnp.float32(scale) * qwk
    return jax.nn.softplus(-z)        # == -log(sigmoid(z)), numerically stable


def _qwk_loss_ref(logits, target, *, num_classes=3, scale=2.0):
    """Pure-JAX reference mirroring the PyTorch module."""
    tgt = jnp.reshape(target, (-1,)).astype(jnp.int32)
    onehot = jax.nn.one_hot(tgt, num_classes, dtype=jnp.float32)       # (N, C)
    probs = jax.nn.softmax(logits.astype(jnp.float32), axis=1)         # (N, C)
    w = jnp.arange(num_classes, dtype=jnp.float32) / (num_classes - 1)
    weights = (w[None, :] - w[:, None]) ** 2
    conf = (probs.T @ onehot).T
    hist_true = jnp.sum(onehot, axis=0)[:, None]
    hist_pred = jnp.sum(probs, axis=0)[:, None]
    expected = (hist_true @ hist_pred.T) / jnp.sum(conf)
    qwk = 1.0 - jnp.sum(weights * conf) / jnp.sum(weights * expected)
    return -jnp.log(jax.nn.sigmoid(scale * qwk))


if __name__ == "__main__":
    num_classes = 3
    scale = 2.0

    key = jax.random.PRNGKey(0)
    k1, k2, k3, k4, k5, k6 = jax.random.split(key, 6)

    # small batch, single tile (with sample padding inside the tile)
    batch = 8
    logits = jax.random.normal(k1, (batch, num_classes), dtype=jnp.float32)
    target = jax.random.randint(k2, (batch, 1), 0, num_classes).astype(jnp.float32)
    loss = qwk_loss(logits, target, num_classes=num_classes, scale=scale)
    jax.block_until_ready(loss)
    ref = _qwk_loss_ref(logits, target, num_classes=num_classes, scale=scale)
    assert jnp.allclose(loss, ref, rtol=1e-4, atol=1e-5), (loss, ref)

    # streaming path with grid > 1 and a ragged tail tile
    big_n = 300
    big_logits = jax.random.normal(k3, (big_n, num_classes), dtype=jnp.float32)
    big_target = jax.random.randint(k4, (big_n, 1), 0, num_classes).astype(jnp.float32)
    big_loss = qwk_loss(big_logits, big_target, num_classes=num_classes, scale=scale,
                        block_n=128)
    jax.block_until_ready(big_loss)
    big_ref = _qwk_loss_ref(big_logits, big_target, num_classes=num_classes, scale=scale)
    assert jnp.allclose(big_loss, big_ref, rtol=1e-4, atol=1e-5), (big_loss, big_ref)

    # streaming path with grid > 1 and NO tail padding (mask-free hot loop)
    even_n = 256
    even_logits = jax.random.normal(k5, (even_n, num_classes), dtype=jnp.float32)
    even_target = jax.random.randint(k6, (even_n,), 0, num_classes)
    even_loss = qwk_loss(even_logits, even_target, num_classes=num_classes, scale=scale,
                         block_n=128)
    jax.block_until_ready(even_loss)
    even_ref = _qwk_loss_ref(even_logits, even_target, num_classes=num_classes, scale=scale)
    assert jnp.allclose(even_loss, even_ref, rtol=1e-4, atol=1e-5), (even_loss, even_ref)

    # bf16 streaming path (halved HBM bytes); compared loosely against the f32 reference
    bf_loss = qwk_loss(big_logits, big_target, num_classes=num_classes, scale=scale,
                       block_n=128, stream_dtype=jnp.bfloat16)
    jax.block_until_ready(bf_loss)
    assert jnp.allclose(bf_loss, big_ref, rtol=1e-1, atol=1e-2), (bf_loss, big_ref)

    print("KERNEL_OK")
</pallas_src>

<mosaic_0001>
module attributes {stable_mosaic.version = 11 : i64} {
  func.func @_qwk_kernel(%arg0: i32, %arg1: memref<3x128xf32, #tpu.memory_space<vmem>>, %arg2: memref<1x128xi32, #tpu.memory_space<vmem>>, %arg3: memref<1x1xf32, #tpu.memory_space<vmem>>, %arg4: memref<3x1xf32, #tpu.memory_space<vmem>>, %arg5: memref<1x128xf32, #tpu.memory_space<vmem>>, %arg6: memref<3x128xf32, #tpu.memory_space<vmem>>) attributes {dimension_semantics = [#tpu.dimension_semantics<arbitrary>], iteration_bounds = array<i64: 1>, scalar_prefetch = 0 : i64, scratch_operands = 2 : i64, tpu.core_type = #tpu.core_type<tc>, window_params = [{transform_indices = @transform_0, window_bounds = array<i64: 3, 128>}, {transform_indices = @transform_1, window_bounds = array<i64: 1, 128>}, {pipeline_mode = #tpu.pipeline_mode<synchronous>, transform_indices = @transform_2, window_bounds = array<i64: 1, 1>}, {pipeline_mode = #tpu.pipeline_mode<synchronous>, transform_indices = @transform_3, window_bounds = array<i64: 3, 1>}]} {
    %c0_i32 = arith.constant 0 : i32
    %0 = arith.cmpi eq, %arg0, %c0_i32 : i32
    %1 = arith.extui %0 : i1 to i32
    %c0_i32_0 = arith.constant 0 : i32
    %2 = arith.cmpi ne, %1, %c0_i32_0 : i32
    scf.if %2 {
      %cst = arith.constant 0.000000e+00 : f32
      %12 = vector.broadcast %cst : f32 to vector<1x128xf32>
      %c0 = arith.constant 0 : index
      %c0_7 = arith.constant 0 : index
      %13 = vector.load %arg5[%c0, %c0_7] : memref<1x128xf32, #tpu.memory_space<vmem>>, vector<1x128xf32>
      tpu.vector_store %arg5[%c0, %c0_7], %12 {strides = array<i32>} : memref<1x128xf32, #tpu.memory_space<vmem>>, vector<1x128xf32>,
      %cst_8 = arith.constant 0.000000e+00 : f32
      %14 = vector.broadcast %cst_8 : f32 to vector<3x128xf32>
      %c0_9 = arith.constant 0 : index
      %c0_10 = arith.constant 0 : index
      %15 = vector.load %arg6[%c0_9, %c0_10] : memref<3x128xf32, #tpu.memory_space<vmem>>, vector<3x128xf32>
      tpu.vector_store %arg6[%c0_9, %c0_10], %14 {strides = array<i32>} : memref<3x128xf32, #tpu.memory_space<vmem>>, vector<3x128xf32>,
    } else {
    }
    %c0_i32_1 = arith.constant 0 : i32
    %3 = arith.cmpi ne, %arg0, %c0_i32_1 : i32
    %4 = arith.extui %3 : i1 to i32
    %c0_i32_2 = arith.constant 0 : i32
    %5 = arith.cmpi ne, %4, %c0_i32_2 : i32
    scf.if %5 {
      %c0 = arith.constant 0 : index
      %c0_7 = arith.constant 0 : index
      %12 = vector.load %arg1[%c0, %c0_7] : memref<3x128xf32, #tpu.memory_space<vmem>>, vector<3x128xf32>
      %c0_8 = arith.constant 0 : index
      %c0_9 = arith.constant 0 : index
      %13 = vector.load %arg2[%c0_8, %c0_9] : memref<1x128xi32, #tpu.memory_space<vmem>>, vector<1x128xi32>
      %cst = arith.constant dense<0xFF800000> : vector<128xf32>
      %14 = vector.multi_reduction <maximumf>, %12, %cst [0] : vector<3x128xf32> to vector<128xf32>
      %15 = vector.shape_cast %14 : vector<128xf32> to vector<1x128xf32>
      %16 = vector.broadcast %15 : vector<1x128xf32> to vector<3x128xf32>
      %17 = arith.subf %12, %16 : vector<3x128xf32>
      %18 = math.exp %17 : vector<3x128xf32>
      %cst_10 = arith.constant dense<0.000000e+00> : vector<128xf32>
      %19 = vector.multi_reduction <add>, %18, %cst_10 [0] : vector<3x128xf32> to vector<128xf32>
      %20 = vector.shape_cast %19 : vector<128xf32> to vector<1x128xf32>
      %21 = tpu.reciprocal %20 : vector<1x128xf32> -> vector<1x128xf32>
      %22 = vector.broadcast %21 : vector<1x128xf32> to vector<3x128xf32>
      %23 = arith.mulf %18, %22 : vector<3x128xf32>
      %24 = tpu.iota {dimensions = array<i32: 0>} : vector<3x1xi32>
      %25 = arith.sitofp %24 : vector<3x1xi32> to vector<3x1xf32>
      %26 = arith.sitofp %13 : vector<1x128xi32> to vector<1x128xf32>
      %27 = vector.broadcast %25 : vector<3x1xf32> to vector<3x128xf32>
      %28 = arith.mulf %27, %23 : vector<3x128xf32>
      %cst_11 = arith.constant dense<0.000000e+00> : vector<128xf32>
      %29 = vector.multi_reduction <add>, %28, %cst_11 [0] : vector<3x128xf32> to vector<128xf32>
      %30 = vector.shape_cast %29 : vector<128xf32> to vector<1x128xf32>
      %31 = arith.mulf %25, %25 : vector<3x1xf32>
      %32 = vector.broadcast %31 : vector<3x1xf32> to vector<3x128xf32>
      %33 = arith.mulf %32, %23 : vector<3x128xf32>
      %cst_12 = arith.constant dense<0.000000e+00> : vector<128xf32>
      %34 = vector.multi_reduction <add>, %33, %cst_12 [0] : vector<3x128xf32> to vector<128xf32>
      %35 = vector.shape_cast %34 : vector<128xf32> to vector<1x128xf32>
      %cst_13 = arith.constant 2.000000e+00 : f32
      %36 = vector.broadcast %cst_13 : f32 to vector<1x128xf32>
      %37 = arith.mulf %36, %26 : vector<1x128xf32>
      %38 = arith.mulf %37, %30 : vector<1x128xf32>
      %39 = arith.subf %35, %38 : vector<1x128xf32>
      %40 = arith.mulf %26, %26 : vector<1x128xf32>
      %41 = arith.addf %39, %40 : vector<1x128xf32>
      %c0_14 = arith.constant 0 : index
      %c0_15 = arith.constant 0 : index
      %42 = vector.load %arg6[%c0_14, %c0_15] : memref<3x128xf32, #tpu.memory_space<vmem>>, vector<3x128xf32>
      %43 = arith.addf %42, %23 : vector<3x128xf32>
      %c0_16 = arith.constant 0 : index
      %c0_17 = arith.constant 0 : index
      %44 = vector.load %arg6[%c0_16, %c0_17] : memref<3x128xf32, #tpu.memory_space<vmem>>, vector<3x128xf32>
      tpu.vector_store %arg6[%c0_16, %c0_17], %43 {strides = array<i32>} : memref<3x128xf32, #tpu.memory_space<vmem>>, vector<3x128xf32>,
      %c0_18 = arith.constant 0 : index
      %c0_19 = arith.constant 0 : index
      %45 = vector.load %arg5[%c0_18, %c0_19] : memref<1x128xf32, #tpu.memory_space<vmem>>, vector<1x128xf32>
      %46 = arith.addf %45, %41 : vector<1x128xf32>
      %c0_20 = arith.constant 0 : index
      %c0_21 = arith.constant 0 : index
      %47 = vector.load %arg5[%c0_20, %c0_21] : memref<1x128xf32, #tpu.memory_space<vmem>>, vector<1x128xf32>
      tpu.vector_store %arg5[%c0_20, %c0_21], %46 {strides = array<i32>} : memref<1x128xf32, #tpu.memory_space<vmem>>, vector<1x128xf32>,
    } else {
    }
    %c0_i32_3 = arith.constant 0 : i32
    %6 = arith.cmpi eq, %arg0, %c0_i32_3 : i32
    %7 = arith.extui %6 : i1 to i32
    %c0_i32_4 = arith.constant 0 : i32
    %8 = arith.cmpi ne, %7, %c0_i32_4 : i32
    scf.if %8 {
      %c0 = arith.constant 0 : index
      %c0_7 = arith.constant 0 : index
      %12 = vector.load %arg1[%c0, %c0_7] : memref<3x128xf32, #tpu.memory_space<vmem>>, vector<3x128xf32>
      %c0_8 = arith.constant 0 : index
      %c0_9 = arith.constant 0 : index
      %13 = vector.load %arg2[%c0_8, %c0_9] : memref<1x128xi32, #tpu.memory_space<vmem>>, vector<1x128xi32>
      %cst = arith.constant dense<0xFF800000> : vector<128xf32>
      %14 = vector.multi_reduction <maximumf>, %12, %cst [0] : vector<3x128xf32> to vector<128xf32>
      %15 = vector.shape_cast %14 : vector<128xf32> to vector<1x128xf32>
      %16 = vector.broadcast %15 : vector<1x128xf32> to vector<3x128xf32>
      %17 = arith.subf %12, %16 : vector<3x128xf32>
      %18 = math.exp %17 : vector<3x128xf32>
      %cst_10 = arith.constant dense<0.000000e+00> : vector<128xf32>
      %19 = vector.multi_reduction <add>, %18, %cst_10 [0] : vector<3x128xf32> to vector<128xf32>
      %20 = vector.shape_cast %19 : vector<128xf32> to vector<1x128xf32>
      %21 = tpu.reciprocal %20 : vector<1x128xf32> -> vector<1x128xf32>
      %22 = vector.broadcast %21 : vector<1x128xf32> to vector<3x128xf32>
      %23 = arith.mulf %18, %22 : vector<3x128xf32>
      %24 = tpu.iota {dimensions = array<i32: 0>} : vector<3x1xi32>
      %25 = arith.sitofp %24 : vector<3x1xi32> to vector<3x1xf32>
      %26 = arith.sitofp %13 : vector<1x128xi32> to vector<1x128xf32>
      %27 = vector.broadcast %25 : vector<3x1xf32> to vector<3x128xf32>
      %28 = arith.mulf %27, %23 : vector<3x128xf32>
      %cst_11 = arith.constant dense<0.000000e+00> : vector<128xf32>
      %29 = vector.multi_reduction <add>, %28, %cst_11 [0] : vector<3x128xf32> to vector<128xf32>
      %30 = vector.shape_cast %29 : vector<128xf32> to vector<1x128xf32>
      %31 = arith.mulf %25, %25 : vector<3x1xf32>
      %32 = vector.broadcast %31 : vector<3x1xf32> to vector<3x128xf32>
      %33 = arith.mulf %32, %23 : vector<3x128xf32>
      %cst_12 = arith.constant dense<0.000000e+00> : vector<128xf32>
      %34 = vector.multi_reduction <add>, %33, %cst_12 [0] : vector<3x128xf32> to vector<128xf32>
      %35 = vector.shape_cast %34 : vector<128xf32> to vector<1x128xf32>
      %cst_13 = arith.constant 2.000000e+00 : f32
      %36 = vector.broadcast %cst_13 : f32 to vector<1x128xf32>
      %37 = arith.mulf %36, %26 : vector<1x128xf32>
      %38 = arith.mulf %37, %30 : vector<1x128xf32>
      %39 = arith.subf %35, %38 : vector<1x128xf32>
      %40 = arith.mulf %26, %26 : vector<1x128xf32>
      %41 = arith.addf %39, %40 : vector<1x128xf32>
      %c0_i32_14 = arith.constant 0 : i32
      %42 = vector.broadcast %c0_i32_14 : i32 to vector<1x128xi32>
      %43 = arith.cmpi sge, %13, %42 : vector<1x128xi32>
      %cst_15 = arith.constant 0.000000e+00 : f32
      %44 = vector.shape_cast %43 : vector<1x128xi1> to vector<1x128xi1>
      %45 = vector.broadcast %44 : vector<1x128xi1> to vector<3x128xi1>
      %46 = vector.broadcast %cst_15 : f32 to vector<3x128xf32>
      %47 = arith.select %45, %23, %46 : vector<3x128xi1>, vector<3x128xf32>
      %cst_16 = arith.constant 0.000000e+00 : f32
      %48 = vector.broadcast %cst_16 : f32 to vector<1x128xf32>
      %49 = arith.select %43, %41, %48 : vector<1x128xi1>, vector<1x128xf32>
      %c0_17 = arith.constant 0 : index
      %c0_18 = arith.constant 0 : index
      %50 = vector.load %arg6[%c0_17, %c0_18] : memref<3x128xf32, #tpu.memory_space<vmem>>, vector<3x128xf32>
      %51 = arith.addf %50, %47 : vector<3x128xf32>
      %c0_19 = arith.constant 0 : index
      %c0_20 = arith.constant 0 : index
      %52 = vector.load %arg6[%c0_19, %c0_20] : memref<3x128xf32, #tpu.memory_space<vmem>>, vector<3x128xf32>
      tpu.vector_store %arg6[%c0_19, %c0_20], %51 {strides = array<i32>} : memref<3x128xf32, #tpu.memory_space<vmem>>, vector<3x128xf32>,
      %c0_21 = arith.constant 0 : index
      %c0_22 = arith.constant 0 : index
      %53 = vector.load %arg5[%c0_21, %c0_22] : memref<1x128xf32, #tpu.memory_space<vmem>>, vector<1x128xf32>
      %54 = arith.addf %53, %49 : vector<1x128xf32>
      %c0_23 = arith.constant 0 : index
      %c0_24 = arith.constant 0 : index
      %55 = vector.load %arg5[%c0_23, %c0_24] : memref<1x128xf32, #tpu.memory_space<vmem>>, vector<1x128xf32>
      tpu.vector_store %arg5[%c0_23, %c0_24], %54 {strides = array<i32>} : memref<1x128xf32, #tpu.memory_space<vmem>>, vector<1x128xf32>,
    } else {
    }
    %c0_i32_5 = arith.constant 0 : i32
    %9 = arith.cmpi eq, %arg0, %c0_i32_5 : i32
    %10 = arith.extui %9 : i1 to i32
    %c0_i32_6 = arith.constant 0 : i32
    %11 = arith.cmpi ne, %10, %c0_i32_6 : i32
    scf.if %11 {
      %c0 = arith.constant 0 : index
      %c0_7 = arith.constant 0 : index
      %12 = vector.load %arg5[%c0, %c0_7] : memref<1x128xf32, #tpu.memory_space<vmem>>, vector<1x128xf32>
      %cst = arith.constant dense<0.000000e+00> : vector<1xf32>
      %13 = vector.multi_reduction <add>, %12, %cst [1] : vector<1x128xf32> to vector<1xf32>
      %14 = vector.shape_cast %13 : vector<1xf32> to vector<1x1xf32>
      %c0_8 = arith.constant 0 : index
      %c0_9 = arith.constant 0 : index
      %15 = vector.load %arg3[%c0_8, %c0_9] : memref<1x1xf32, #tpu.memory_space<vmem>>, vector<1x1xf32>
      tpu.vector_store %arg3[%c0_8, %c0_9], %14 {strides = array<i32>} : memref<1x1xf32, #tpu.memory_space<vmem>>, vector<1x1xf32>,
      %c0_10 = arith.constant 0 : index
      %c0_11 = arith.constant 0 : index
      %16 = vector.load %arg6[%c0_10, %c0_11] : memref<3x128xf32, #tpu.memory_space<vmem>>, vector<3x128xf32>
      %cst_12 = arith.constant dense<0.000000e+00> : vector<3xf32>
      %17 = vector.multi_reduction <add>, %16, %cst_12 [1] : vector<3x128xf32> to vector<3xf32>
      %18 = vector.shape_cast %17 : vector<3xf32> to vector<3x1xf32>
      %c0_13 = arith.constant 0 : index
      %c0_14 = arith.constant 0 : index
      %19 = vector.load %arg4[%c0_13, %c0_14] : memref<3x1xf32, #tpu.memory_space<vmem>>, vector<3x1xf32>
      tpu.vector_store %arg4[%c0_13, %c0_14], %18 {strides = array<i32>} : memref<3x1xf32, #tpu.memory_space<vmem>>, vector<3x1xf32>,
    } else {
    }
    return
  }
  func.func @transform_0(%arg0: i32) -> (i32, i32) {
    %c0_i32 = arith.constant 0 : i32
    %c0_i32_0 = arith.constant 0 : i32
    return %c0_i32, %arg0 : i32, i32
  }
  func.func @transform_1(%arg0: i32) -> (i32, i32) {
    %c0_i32 = arith.constant 0 : i32
    %c0_i32_0 = arith.constant 0 : i32
    return %c0_i32, %arg0 : i32, i32
  }
  func.func @transform_2(%arg0: i32) -> (i32, i32) {
    %c0_i32 = arith.constant 0 : i32
    %c0_i32_0 = arith.constant 0 : i32
    %c0_i32_1 = arith.constant 0 : i32
    return %c0_i32, %c0_i32_0 : i32, i32
  }
  func.func @transform_3(%arg0: i32) -> (i32, i32) {
    %c0_i32 = arith.constant 0 : i32
    %c0_i32_0 = arith.constant 0 : i32
    %c0_i32_1 = arith.constant 0 : i32
    return %c0_i32, %c0_i32_0 : i32, i32
  }
}

</mosaic_0001>

<bundles_post_ra>
// kernel: tpu_custom_call.1
= control target key start
LH: loop header
LB: loop body
LE: loop exit
PB: predicated region body
PF: predicated region fallthrough
CT: control target
= control target key end

     0   :  { %9 = vsyncpa [#allocation5], 0  ;;  %s306_s0 = inlined_call_operand.hbm [shape: f32[3,128], index: 0, kind: input, shape index: {}]   ;;  %s307_s1 = inlined_call_operand.vmem [shape: s32[1,128], index: 1, kind: input, shape index: {}]   ;;  %s308_s2 = inlined_call_operand.hbm [shape: f32[1,1], index: 2, kind: output, shape index: {0}]   ;;  %s309_s3 = inlined_call_operand.vmem [shape: f32[3,1], index: 3, kind: output, shape index: {1}]  }
   0x1   :  { %10 = vsyncpa [#allocation6], 0  ;;  %s244_s12 = smov [#allocation4]   ;;  %s196_s16 = scalar_lea.hbm %s306_s0, 64 }
   0x2   :  { %s17_s13 = sshll.u32 %s244_s12, 4  ;;  %p197_p0 = scmp.ne.s32.totalorder %s306_s0, %s196_s16  ;;  %s18_s13 = int_to_ptr.vmem [resolvable:$true] %s17_s13 }
   0x3   :  { %p200_p1 = scmp.lt.u32.totalorder %s196_s16, %s306_s0 }
   0x5   :  { %p202_p2 = pnand %p200_p1, %p197_p0 }
   0x7   :  { %205 = shalt.err (!%p202_p2)
}
   0x8   :  { %s206_s21 = scalar_lea.vmem %s18_s13, 64  ;;  %p211_p4 = scmp.lt.s32.totalorder %s18_s13, %s18_s13 }
   0x9   :  { %p207_p3 = scmp.ne.s32.totalorder %s18_s13, %s206_s21  ;;  %p212_p5 = scmp.lt.s32.totalorder %s206_s21, %s206_s21 }
   0xb   :  { %p213_p6 = por %p212_p5, %p211_p4 }
   0xd   :  { %p214_p7 = pnand %p213_p6, %p207_p3 }
   0xf   :  { %217 = shalt.err (!%p214_p7)
}
  0x10   :  { %20 = dma.hbm_to_vmem [thread:$0]  %s306_s0, 64, %s18_s13, [#allocation5]  }
  0x11   :  { %240 = dma.done.wait [#allocation5], 64  }
  0x12   :  { %241 = vsyncadd [#allocation5], 4294967232  ;;  %v245_v0 = vmov 0.0   ;;  %vm95_vm0 = vcmask 1042432   ;;  %v93_v1 = vld [vmem:[#allocation4] sm:$0x7]  ;;  %v115_v18 = vlaneseq }
  0x13   :  { %30 = vst [vmem:[#allocation2] sm:$0x1] %v245_v0  ;;  %31 = vst [vmem:[#allocation3] sm:$0x7] %v245_v0  ;;  %v96_v2 = vsel %vm95_vm0, %v93_v1, -inf  ;;  %v246_v23 = vmov 0  }
  0x14   :  { %v97_v3 = vrot.slane %v96_v2, 4  ;;  %v94_v20 = vld [vmem:[%s307_s1] sm:$0x1]  ;;  %v116_v21 = vshrl.u32 %v115_v18, 7  ;;  %vm157_vm3 = vcmask 1040384   ;;  %s247_s1 = smov [#allocation7]  }
  0x15   :  { %vm141_vm1 = vcmp.ge.s32.totalorder %v94_v20, 0  ;;  %v118_v41 = vcvt.s32.f32 %v94_v20  ;;  %s175_s25 = sshll.u32 %s247_s1, 4  ;;  %vm161_vm4 = vcmask 0   ;;  %vm167_vm5 = vcmask 2048   ;;  %s176_s25 = int_to_ptr.vmem [resolvable:$true] %s175_s25 }
  0x16   :  { %v98_v4 = vmax.f32 %v96_v2, %v97_v3  ;;  %v145_v22 = vsub.s32 0, %v116_v21  ;;  %v142_v24 = vsel %vm141_vm1, 1, %v246_v23  ;;  %v117_v25 = vcvt.s32.f32 %v116_v21  ;;  %s218_s26 = scalar_lea.vmem %s176_s25, 16  ;;  %s222_s27 = scalar_lea.vmem %s176_s25, 32 }
  0x17   :  { %v136_v48 = vmul.f32 2.0, %v118_v41  ;;  %v139_v52 = vmul.f32 %v118_v41, %v118_v41  ;;  %p219_p8 = scmp.ne.s32.totalorder %s176_s25, %s218_s26  ;;  %p223_p9 = scmp.lt.s32.totalorder %s176_s25, %s176_s25 }
  0x18   :  { %v99_v5 = vrot.slane %v98_v4, 2  ;;  %v146_v26 = vrot.slane %v142_v24, %v145_v22  ;;  %v127_v27 = vmul.f32 %v117_v25, %v117_v25  ;;  %p224_p10 = scmp.lt.s32.totalorder %s222_s27, %s218_s26 }
  0x1a   :  { %v100_v6 = vmax.f32 %v98_v4, %v99_v5  ;;  %vm147_vm2 = vcmp.eq.s32.totalorder %v146_v26, 1  ;;  %v150_v30 = vld [vmem:[#allocation3] sm:$0x7]  ;;  %v153_v55 = vld [vmem:[#allocation2] sm:$0x1]  ;;  %p225_p11 = por %p224_p10, %p223_p9 }
  0x1c   :  { %v101_v7 = vrot.slane %v100_v6, 1  ;;  %p226_p12 = pnand %p225_p11, %p219_p8 }
  0x1e   :  { %v102_v8 = vmax.f32 %v100_v6, %v101_v7 }
  0x20   :  { %v103_v9 = vsub.f32 %v93_v1, %v102_v8 }
  0x22   :  { %v104_v10 = vmul.f32 1.442695, %v103_v9 }
  0x24   :  { %192 = vpow2.f32 %v104_v10 }
  0x2e   :  { %v193_v11 = vpop.eup %192 }
  0x2f   :  { %v106_v12 = vsel %vm95_vm0, %v193_v11, 0.0 }
  0x30   :  { %v107_v13 = vrot.slane %v106_v12, 4 }
  0x32   :  { %v108_v14 = vadd.f32 %v107_v13, %v106_v12 }
  0x34   :  { %v109_v15 = vrot.slane %v108_v14, 2 }
  0x36   :  { %v110_v16 = vadd.f32 %v109_v15, %v108_v14 }
  0x38   :  { %v111_v17 = vrot.slane %v110_v16, 1 }
  0x3a   :  { %v112_v19 = vadd.f32 %v111_v17, %v110_v16 }
  0x3c   :  { %194 = vrcp.f32 %v112_v19 }
  0x46   :  { %v195_v28 = vpop.eup %194 }
  0x47   :  { %v114_v29 = vmul.f32 %v195_v28, %v193_v11 }
  0x49   :  { %v119_v31 = vmul.f32 %v117_v25, %v114_v29  ;;  %v128_v32 = vmul.f32 %v127_v27, %v114_v29  ;;  %v148_v33 = vsel %vm147_vm2, %v114_v29, 0.0 }
  0x4a   :  { %v151_v34 = vadd.f32 %v150_v30, %v148_v33 }
  0x4b   :  { %v120_v35 = vsel %vm95_vm0, %v119_v31, 0.0  ;;  %v129_v36 = vsel %vm95_vm0, %v128_v32, 0.0 }
  0x4c   :  { %v121_v37 = vrot.slane %v120_v35, 4  ;;  %v130_v38 = vrot.slane %v129_v36, 4  ;;  %152 = vst [vmem:[#allocation3] sm:$0x7] %v151_v34 }
  0x4e   :  { %v122_v39 = vadd.f32 %v121_v37, %v120_v35  ;;  %v131_v40 = vadd.f32 %v130_v38, %v129_v36 }
  0x50   :  { %v123_v42 = vrot.slane %v122_v39, 2  ;;  %v132_v43 = vrot.slane %v131_v40, 2 }
  0x52   :  { %v124_v44 = vadd.f32 %v123_v42, %v122_v39  ;;  %v133_v45 = vadd.f32 %v132_v43, %v131_v40 }
  0x53   :  { %v163_v59 = vld [vmem:[#allocation3] sm:$0x7] }
  0x54   :  { %v125_v46 = vrot.slane %v124_v44, 1  ;;  %v134_v47 = vrot.slane %v133_v45, 1  ;;  %v164_v61 = vsel %vm95_vm0, %v163_v59, 0.0 }
  0x56   :  { %v126_v49 = vadd.f32 %v125_v46, %v124_v44  ;;  %v135_v50 = vadd.f32 %v134_v47, %v133_v45 }
  0x58   :  { %v137_v51 = vmul.f32 %v136_v48, %v126_v49 }
  0x5a   :  { %v138_v53 = vsub.f32 %v135_v50, %v137_v51 }
  0x5c   :  { %v140_v54 = vadd.f32 %v139_v52, %v138_v53 }
  0x5e   :  { %v149_v56 = vsel %vm141_vm1, %v140_v54, 0.0 }
  0x5f   :  { %v154_v57 = vadd.f32 %v153_v55, %v149_v56 }
  0x61   :  { %155 = vst [vmem:[#allocation2] sm:$0x1] %v154_v57 }
  0x68   :  { %v156_v58 = vld [vmem:[#allocation2] sm:$0x1] }
  0x69   :  { %v158_v60 = vsel %vm157_vm3, %v156_v58, 0.0 }
  0x6a   :  { %159 = vadd.xlane.f32.xlu0 %v158_v60 }
  0x6e   :  { %165 = vadd.xlane.f32.xlu0 %v164_v61 }
  0xf7   :  { %v160_v62 = vpop.xlane.xlu0 %159 }
  0xf8   :  { %162 = vst.msk [vmem:[#allocation7] sm:$0x1] %vm161_vm4, %v160_v62 }
  0xf9   :  { %229 = shalt.err (!%p226_p12)
}
  0xfa   :  { %s230_s30 = scalar_lea.hbm %s308_s2, 16 }
  0xfb   :  { %p231_p13 = scmp.ne.s32.totalorder %s308_s2, %s230_s30  ;;  %p234_p0 = scmp.lt.u32.totalorder %s230_s30, %s308_s2 }
  0xfd   :  { %p236_p1 = pnand %p234_p0, %p231_p13 }
  0xff   :  { %239 = shalt.err (!%p236_p1)
}
 0x100   :  { %178 = dma.vmem_to_hbm [thread:$0]  %s176_s25, 16, %s308_s2, [#allocation6]   ;;  %v166_v63 = vpop.xlane.xlu0 %165 }
 0x101   :  { %168 = vst.msk [vmem:[%s309_s3] sm:$0x7] %vm167_vm5, %v166_v63 }
 0x102   :  { %242 = dma.done.wait [#allocation6], 16  }
 0x103   :  { %243 = vsyncadd [#allocation6], 4294967280 }
 0x104   :  { %186 = vsyncpa [#allocation5], 1 }
 0x105   :  { %187 = vsyncpa [#allocation6], 1 }

</bundles_post_ra>
